<compile_context>
chip_gen: v6e
topology: v6e:2x2x1
jax: 0.10.0
libtpu: 0.0.40
codegen_flags: <defaults>
</compile_context>

<pallas_src>
import functools

import jax
import jax.numpy as jnp
from jax.experimental import pallas as pl
from jax.experimental.pallas import tpu as pltpu


def _down_conv_kernel(xs_ref, w_ref, o_ref, lhs_ref, *, a_h, a_w, ck, row_tile, wo, cout,
                      mblock, precision):
    # xs_ref : (mblock, row_tile + a_h - 1, wo + a_w - 1, ck)  space-to-depth input tile
    # w_ref  : (a_h*a_w*ck, cout)  all taps stacked; constant index_map -> stays resident
    # o_ref  : (mblock, row_tile, wo, cout)
    # lhs_ref: (mblock*row_tile*wo, a_h*a_w*ck) VMEM scratch: the fused-K im2col LHS
    m = mblock * row_tile * wo
    tap = 0
    for a in range(a_h):                       # statically unrolled; taps = a_h * a_w
        for b in range(a_w):
            # Un-strided static slice; only the b-offset W slice costs a sublane shift.
            patch = xs_ref[:, a:a + row_tile, b:b + wo, :]     # (mblock, row_tile, wo, ck)
            # wo is padded to a multiple of 8 by the wrapper, so this collapse is a view.
            lhs_ref[:, tap * ck:(tap + 1) * ck] = (
                patch.reshape(m, ck).astype(lhs_ref.dtype))
            tap += 1
    # Single big-M, fused-K matmul on the MXU; f32 accumulation.
    out = jnp.dot(lhs_ref[...], w_ref[...],
                  preferred_element_type=jnp.float32, precision=precision)
    o_ref[...] = out.reshape(mblock, row_tile, wo, cout).astype(o_ref.dtype)


def _step_vmem_bytes(row_tile, *, a_h, ws_pad, ck, wo_pad, cout, taps, mblock, lhs_itemsize):
    th_in = row_tile + a_h - 1
    in_blk = mblock * th_in * ws_pad * ck * 4
    out_blk = mblock * row_tile * wo_pad * cout * 4
    w_blk = taps * ck * cout * lhs_itemsize
    lhs_blk = mblock * row_tile * wo_pad * taps * ck * lhs_itemsize
    # double-buffered in/out + (double-buffered) resident weights + im2col scratch
    return 2 * (in_blk + out_blk) + 2 * w_blk + lhs_blk


def _pick_row_tile(ho, *, budget, **kw):
    divisors = [t for t in range(1, ho + 1) if ho % t == 0]
    fitting = [t for t in divisors if _step_vmem_bytes(t, **kw) <= budget] or [1]
    t = max(fitting)
    if ho // t < 2:
        # prefer >= 2 row tiles: enough parallel grid steps for pipelining / both v7x cores
        smaller = [d for d in fitting if ho // d >= 2]
        if smaller:
            t = max(smaller)
    return t


def down(x, weight, *, stride, padding,
         precision=jax.lax.Precision.HIGHEST, use_bf16_operands=False,
         row_tile=None, mblock=1, vmem_block_budget_bytes=12 * 2**20):
    """Pallas implementation of Down.forward: y = Conv2d(x), bias=False.

    x      : (B, Cin, H, W)     float32 (NCHW, like PyTorch)
    weight : (Cout, Cin, kh, kw) float32 (OIHW, like PyTorch)
    returns (B, Cout, Ho, Wo)   float32
    """
    B, Cin, H, W = x.shape
    Cout, Cin_w, kh, kw = weight.shape
    assert Cin == Cin_w
    s = int(stride)
    p = int(padding)

    Ho = (H + 2 * p - kh) // s + 1
    Wo = (W + 2 * p - kw) // s + 1
    assert Ho > 0 and Wo > 0

    a_h = -(-kh // s)                 # taps along H after phase (space-to-depth) decomposition
    a_w = -(-kw // s)
    taps = a_h * a_w
    ck = s * s * Cin                  # per-tap contraction depth

    # Pad the output width to a multiple of 8 so in-kernel collapses are pure views
    # (extra columns read zero padding and are cropped after the kernel).
    wo_pad = -(-Wo // 8) * 8
    Hs = Ho + a_h - 1
    Ws_pad = wo_pad + a_w - 1
    Hp = s * Hs
    Wp_pad = s * Ws_pad

    lhs_dtype = jnp.bfloat16 if use_bf16_operands else x.dtype
    lhs_itemsize = 2 if use_bf16_operands else 4
    dot_precision = None if use_bf16_operands else precision

    # ---- row-tile selection against a per-generation-safe VMEM budget -------------------
    size_kw = dict(a_h=a_h, ws_pad=Ws_pad, ck=ck, wo_pad=wo_pad, cout=Cout, taps=taps,
                   mblock=mblock, lhs_itemsize=lhs_itemsize)
    if row_tile is None:
        row_tile = _pick_row_tile(Ho, budget=vmem_block_budget_bytes, **size_kw)
    assert Ho % row_tile == 0, "row_tile must divide the output height"
    nH = Ho // row_tile
    th_in = row_tile + a_h - 1
    num_chunks = B * nH
    assert num_chunks % mblock == 0, "mblock must divide B * (Ho // row_tile)"

    # ---- glue: pad + space-to-depth + overlapping row tiles (halo baked in) -------------
    # Same byte count as the input apart from the (a_h-1)-row halo per tile; under jit XLA
    # fuses the transpose / pad / gather into essentially one relayout pass.
    x_nhwc = jnp.transpose(x, (0, 2, 3, 1))                         # (B, H, W, Cin)
    pad_h_hi = max(0, Hp - p - H)
    pad_w_hi = max(0, Wp_pad - p - W)
    x_p = jnp.pad(x_nhwc, ((0, 0), (p, pad_h_hi), (p, pad_w_hi), (0, 0)))
    x_p = x_p[:, :Hp, :Wp_pad, :]
    x6 = x_p.reshape(B, Hs, s, Ws_pad, s, Cin)
    row_idx = jnp.arange(nH)[:, None] * row_tile + jnp.arange(th_in)[None, :]
    xs_t = x6[:, row_idx]                                           # (B, nH, th_in, s, Ws_pad, s, Cin)
    xs_t = xs_t.transpose(0, 1, 2, 4, 3, 5, 6)                      # (B, nH, th_in, Ws_pad, s, s, Cin)
    xs_t = xs_t.reshape(num_chunks, th_in, Ws_pad, ck)

    # ---- glue: repack weights per tap: (taps*ck, Cout), tap-major, (r, q, Cin) minor ----
    w = jnp.transpose(weight, (2, 3, 1, 0))                         # (kh, kw, Cin, Cout)
    w = jnp.pad(w, ((0, a_h * s - kh), (0, a_w * s - kw), (0, 0), (0, 0)))
    w = w.reshape(a_h, s, a_w, s, Cin, Cout).transpose(0, 2, 1, 3, 4, 5)
    w_mat = w.reshape(taps * ck, Cout).astype(lhs_dtype)

    # ---- Pallas call ---------------------------------------------------------------------
    m = mblock * row_tile * wo_pad
    step_bytes = _step_vmem_bytes(row_tile, **size_kw)
    vmem_limit_bytes = int(min(max(2 * step_bytes, 32 * 2**20), 64 * 2**20))

    flops = 2 * num_chunks * row_tile * wo_pad * taps * ck * Cout
    bytes_accessed = (num_chunks * th_in * Ws_pad * ck * 4
                      + taps * ck * Cout * lhs_itemsize
                      + num_chunks * row_tile * wo_pad * Cout * 4)

    kernel = functools.partial(
        _down_conv_kernel,
        a_h=a_h, a_w=a_w, ck=ck, row_tile=row_tile, wo=wo_pad, cout=Cout,
        mblock=mblock, precision=dot_precision)

    out = pl.pallas_call(
        kernel,
        out_shape=jax.ShapeDtypeStruct((num_chunks, row_tile, wo_pad, Cout), x.dtype),
        grid=(num_chunks // mblock,),
        in_specs=[
            pl.BlockSpec((mblock, th_in, Ws_pad, ck), lambda i: (i, 0, 0, 0)),
            pl.BlockSpec((taps * ck, Cout), lambda i: (0, 0)),      # weights: resident
        ],
        out_specs=pl.BlockSpec((mblock, row_tile, wo_pad, Cout), lambda i: (i, 0, 0, 0)),
        scratch_shapes=[pltpu.VMEM((m, taps * ck), lhs_dtype)],     # fused-K im2col LHS
        compiler_params=pltpu.CompilerParams(
            dimension_semantics=("parallel",),
            vmem_limit_bytes=vmem_limit_bytes),
        cost_estimate=pl.CostEstimate(
            flops=flops, transcendentals=0, bytes_accessed=bytes_accessed),
    )(xs_t, w_mat)

    out = out.reshape(B, Ho, wo_pad, Cout)[:, :, :Wo, :]            # drop the Wo padding
    return jnp.transpose(out, (0, 3, 1, 2))                         # NHWC -> NCHW


if __name__ == "__main__":
    def reference(x, w, s, p):
        return jax.lax.conv_general_dilated(
            x, w, window_strides=(s, s), padding=((p, p), (p, p)),
            dimension_numbers=("NCHW", "OIHW", "NCHW"),
            precision=jax.lax.Precision.HIGHEST)

    key = jax.random.PRNGKey(0)
    configs = [
        # (B, Cin, H,  W,  Cout, k, s, p)
        (2, 16, 16, 16, 32, 3, 2, 1),   # the canonical Down(k=3, s=2, p=1) block
        (2,  8, 15, 13, 16, 3, 2, 1),   # non-divisible / odd H, W
        (2,  8, 12, 12, 16, 5, 2, 2),   # k > 2*s  ->  3x3 taps after phase decomposition
        (1,  8, 10, 10, 16, 3, 1, 0),   # stride 1, no padding
    ]
    for idx, (B, Cin, H, W, Cout, k, s, p) in enumerate(configs):
        kx, kw_ = jax.random.split(jax.random.fold_in(key, idx))
        x = jax.random.normal(kx, (B, Cin, H, W), jnp.float32)
        wgt = 0.1 * jax.random.normal(kw_, (Cout, Cin, k, k), jnp.float32)
        run = jax.jit(functools.partial(down, stride=s, padding=p))
        out = jax.block_until_ready(run(x, wgt))
        ref = reference(x, wgt, s, p)
        assert out.shape == ref.shape, (out.shape, ref.shape)
        err = float(jnp.max(jnp.abs(out - ref)))
        assert jnp.allclose(out, ref, atol=1e-3, rtol=1e-3), f"config {idx}: max abs err {err}"

    # Flag-gated fast path (perf-review item): bf16 operands on the MXU, f32 accumulation.
    B, Cin, H, W, Cout, k, s, p = configs[0]
    kx, kw_ = jax.random.split(jax.random.fold_in(key, 0))
    x = jax.random.normal(kx, (B, Cin, H, W), jnp.float32)
    wgt = 0.1 * jax.random.normal(kw_, (Cout, Cin, k, k), jnp.float32)
    run_fast = jax.jit(functools.partial(down, stride=s, padding=p, use_bf16_operands=True))
    out_fast = jax.block_until_ready(run_fast(x, wgt))
    ref = reference(x, wgt, s, p)
    err_fast = float(jnp.max(jnp.abs(out_fast - ref)))
    assert jnp.allclose(out_fast, ref, atol=5e-2, rtol=5e-2), f"bf16 path max abs err {err_fast}"

    print("KERNEL_OK")
</pallas_src>

<mosaic_0001>
module attributes {stable_mosaic.version = 11 : i64} {
  func.func @_down_conv_kernel(%arg0: i32, %arg1: memref<1x5x9x64xf32, #tpu.memory_space<vmem>>, %arg2: memref<256x32xf32, #tpu.memory_space<vmem>>, %arg3: memref<1x4x8x32xf32, #tpu.memory_space<vmem>>, %arg4: memref<32x256xf32, #tpu.memory_space<vmem>>) attributes {dimension_semantics = [#tpu.dimension_semantics<parallel>], iteration_bounds = array<i64: 4>, scalar_prefetch = 0 : i64, scratch_operands = 1 : i64, tpu.core_type = #tpu.core_type<tc>, window_params = [{transform_indices = @transform_0, window_bounds = array<i64: 1, 5, 9, 64>}, {pipeline_mode = #tpu.pipeline_mode<synchronous>, transform_indices = @transform_1, window_bounds = array<i64: 256, 32>}, {transform_indices = @transform_2, window_bounds = array<i64: 1, 4, 8, 32>}]} {
    %c0 = arith.constant 0 : index
    %c0_0 = arith.constant 0 : index
    %c0_1 = arith.constant 0 : index
    %c0_2 = arith.constant 0 : index
    %0 = vector.load %arg1[%c0, %c0_0, %c0_1, %c0_2] : memref<1x5x9x64xf32, #tpu.memory_space<vmem>>, vector<1x4x8x64xf32>
    %1 = vector.shape_cast %0 : vector<1x4x8x64xf32> to vector<32x64xf32>
    %c0_3 = arith.constant 0 : index
    %c0_4 = arith.constant 0 : index
    %2 = vector.load %arg4[%c0_3, %c0_4] : memref<32x256xf32, #tpu.memory_space<vmem>>, vector<32x64xf32>
    tpu.vector_store %arg4[%c0_3, %c0_4], %1 {strides = array<i32>} : memref<32x256xf32, #tpu.memory_space<vmem>>, vector<32x64xf32>,
    %c0_5 = arith.constant 0 : index
    %c0_6 = arith.constant 0 : index
    %c1 = arith.constant 1 : index
    %c0_7 = arith.constant 0 : index
    %3 = vector.load %arg1[%c0_5, %c0_6, %c1, %c0_7] : memref<1x5x9x64xf32, #tpu.memory_space<vmem>>, vector<1x4x8x64xf32>
    %4 = vector.shape_cast %3 : vector<1x4x8x64xf32> to vector<32x64xf32>
    %c0_8 = arith.constant 0 : index
    %c64 = arith.constant 64 : index
    %5 = vector.load %arg4[%c0_8, %c64] : memref<32x256xf32, #tpu.memory_space<vmem>>, vector<32x64xf32>
    tpu.vector_store %arg4[%c0_8, %c64], %4 {strides = array<i32>} : memref<32x256xf32, #tpu.memory_space<vmem>>, vector<32x64xf32>,
    %c0_9 = arith.constant 0 : index
    %c1_10 = arith.constant 1 : index
    %c0_11 = arith.constant 0 : index
    %c0_12 = arith.constant 0 : index
    %6 = vector.load %arg1[%c0_9, %c1_10, %c0_11, %c0_12] : memref<1x5x9x64xf32, #tpu.memory_space<vmem>>, vector<1x4x8x64xf32>
    %7 = vector.shape_cast %6 : vector<1x4x8x64xf32> to vector<32x64xf32>
    %c0_13 = arith.constant 0 : index
    %c128 = arith.constant 128 : index
    %8 = vector.load %arg4[%c0_13, %c128] : memref<32x256xf32, #tpu.memory_space<vmem>>, vector<32x64xf32>
    tpu.vector_store %arg4[%c0_13, %c128], %7 {strides = array<i32>} : memref<32x256xf32, #tpu.memory_space<vmem>>, vector<32x64xf32>,
    %c0_14 = arith.constant 0 : index
    %c1_15 = arith.constant 1 : index
    %c1_16 = arith.constant 1 : index
    %c0_17 = arith.constant 0 : index
    %9 = vector.load %arg1[%c0_14, %c1_15, %c1_16, %c0_17] : memref<1x5x9x64xf32, #tpu.memory_space<vmem>>, vector<1x4x8x64xf32>
    %10 = vector.shape_cast %9 : vector<1x4x8x64xf32> to vector<32x64xf32>
    %c0_18 = arith.constant 0 : index
    %c192 = arith.constant 192 : index
    %11 = vector.load %arg4[%c0_18, %c192] : memref<32x256xf32, #tpu.memory_space<vmem>>, vector<32x64xf32>
    tpu.vector_store %arg4[%c0_18, %c192], %10 {strides = array<i32>} : memref<32x256xf32, #tpu.memory_space<vmem>>, vector<32x64xf32>,
    %c0_19 = arith.constant 0 : index
    %c0_20 = arith.constant 0 : index
    %12 = vector.load %arg4[%c0_19, %c0_20] : memref<32x256xf32, #tpu.memory_space<vmem>>, vector<32x256xf32>
    %c0_21 = arith.constant 0 : index
    %c0_22 = arith.constant 0 : index
    %13 = vector.load %arg2[%c0_21, %c0_22] : memref<256x32xf32, #tpu.memory_space<vmem>>, vector<256x32xf32>
    %cst = arith.constant dense<0.000000e+00> : vector<32x32xf32>
    %14 = tpu.matmul %12, %13, %cst {dimension_numbers = #tpu.dot_dimension_numbers<[1], [0], [0], [1], [0, 0, 1, 1], [], []>, precision = #tpu.contract_precision<fp32>} : vector<32x256xf32>, vector<256x32xf32>, vector<32x32xf32> -> vector<32x32xf32>
    %15 = vector.shape_cast %14 : vector<32x32xf32> to vector<1x4x8x32xf32>
    %c0_23 = arith.constant 0 : index
    %c0_24 = arith.constant 0 : index
    %c0_25 = arith.constant 0 : index
    %c0_26 = arith.constant 0 : index
    %16 = vector.load %arg3[%c0_23, %c0_24, %c0_25, %c0_26] : memref<1x4x8x32xf32, #tpu.memory_space<vmem>>, vector<1x4x8x32xf32>
    tpu.vector_store %arg3[%c0_23, %c0_24, %c0_25, %c0_26], %15 {strides = array<i32>} : memref<1x4x8x32xf32, #tpu.memory_space<vmem>>, vector<1x4x8x32xf32>,
    return
  }
  func.func @transform_0(%arg0: i32) -> (i32, i32, i32, i32) {
    %c0_i32 = arith.constant 0 : i32
    %c0_i32_0 = arith.constant 0 : i32
    %c0_i32_1 = arith.constant 0 : i32
    %c0_i32_2 = arith.constant 0 : i32
    return %arg0, %c0_i32, %c0_i32_0, %c0_i32_1 : i32, i32, i32, i32
  }
  func.func @transform_1(%arg0: i32) -> (i32, i32) {
    %c0_i32 = arith.constant 0 : i32
    %c0_i32_0 = arith.constant 0 : i32
    %c0_i32_1 = arith.constant 0 : i32
    return %c0_i32, %c0_i32_0 : i32, i32
  }
  func.func @transform_2(%arg0: i32) -> (i32, i32, i32, i32) {
    %c0_i32 = arith.constant 0 : i32
    %c0_i32_0 = arith.constant 0 : i32
    %c0_i32_1 = arith.constant 0 : i32
    %c0_i32_2 = arith.constant 0 : i32
    return %arg0, %c0_i32, %c0_i32_0, %c0_i32_1 : i32, i32, i32, i32
  }
}

</mosaic_0001>

<bundles_post_ra>
// kernel: down.1
= control target key start
LH: loop header
LB: loop body
LE: loop exit
PB: predicated region body
PF: predicated region fallthrough
CT: control target
= control target key end

     0   :  { %7 = vsyncpa [#allocation4], 0  ;;  %s2628_s0 = inlined_call_operand.vmem [shape: f32[4,5,9,64], index: 0, kind: input, shape index: {}]   ;;  %s2629_s1 = inlined_call_operand.vmem [shape: f32[256,32], index: 1, kind: input, shape index: {}]   ;;  %s2630_s2 = inlined_call_operand.hbm [shape: f32[4,4,8,32], index: 2, kind: output, shape index: {}]  }
   0x1   :  { %9 = vsyncpa [#allocation4 + $0x1], 0  ;;  %s1768_s9 = smov 0   ;;  %s1770_s10 = smov 0  }
   0x2   :  { %s1772_s11 = smov 0   ;;  %s1774_s12 = smov 0  }
   0x3 LB: > { %s1789_s13 = sadd.s32 4294967295, %s1747_s12   ;;  %s1360_s14 = sadd.s32 4294967294, %s1747_s12   ;;  %s1747_s12 = sphi %s1774_s12, %s2832_s12   ;;  %s1743_s11 = sphi %s1772_s11, %s2831_s11   ;;  %s1739_s10 = sphi %s1770_s10, %s2830_s10   ;;  %s1735_s9 = sphi %s1768_s9, %s2829_s9  }
   0x4   : > { %s1793_s15 = sadd.s32 1, %s1747_s12   ;;  %s69_s16 = sadd.s32 1, %s1743_s11 }
   0x5   : > { %s66_s17 = ssub.s32 %s1747_s12, %s1793_s15  ;;  %p79_p0 = scmp.ne.s32.totalorder %s1743_s11, %s1739_s10 }
   0x6   : > { %p67_p1 = scmp.eq.s32.totalorder %s66_s17, 0  ;;  %p80_p2 = scmp.eq.s32.totalorder %s1789_s13, 3 }
   0x7   : > { %p85_p3 = scmp.ne.s32.totalorder %s1739_s10, %s1735_s9  ;;  %p86_p4 = scmp.eq.s32.totalorder %s1360_s14, 3 }
   0x8   : > { %s1804_s18 = scalar_select %p67_p1, %s1743_s11, %s69_s16  }
   0x9   : > { %p1806_p5 = por %p80_p2, %p79_p0  ;;  %p1810_p6 = por %p86_p4, %p85_p3 }
   0xa   : > { %p1363_p7 = scmp.ge.s32.totalorder %s1747_s12, 1  ;;  %p115_p8 = scmp.lt.s32.totalorder %s1747_s12, 5 }
   0xc   : > { %p116_p9 = pnand %p1363_p7, %p115_p8 }
   0xe   : > { %119 = sbr.rel (%p116_p9) target bundleno = 469 (0x1d5), region = 28 }
  0x13   : > { %p137_p10 = scmp.lt.s32.totalorder %s1789_s13, 3  ;;  %v248_v0 = vld [vmem:[%s2629_s1 + $0xf8] sm:$0xff]  ;;  %v247_v2 = vld [vmem:[%s2629_s1 + $0xf0] sm:$0xff]  ;;  %vm146_vm0 = vcmask 523264   ;;  %v246_v7 = vld [vmem:[%s2629_s1 + $0xe8] sm:$0xff]  ;;  %s1749_s29 = smov 64  }
  0x14   : > { %v232_v1 = vld [vmem:[%s2629_s1 + $0x78] sm:$0xff]  ;;  %v1826_v3 = vand.u32 4294901760, %v248_v0  ;;  %v1830_v5 = vand.u32 4294901760, %v247_v2  ;;  %v231_v6 = vld [vmem:[%s2629_s1 + $0x70] sm:$0xff]  ;;  %v230_v8 = vld [vmem:[%s2629_s1 + $0x68] sm:$0xff]  ;;  %v1844_v10 = vand.u32 4294901760, %v246_v7 }
  0x15   : > { %v1828_v4 = vand.u32 4294901760, %v232_v1  ;;  %s138_s5 = scalar_select %p137_p10, %s1789_s13, 3  ;;  %v1842_v9 = vand.u32 4294901760, %v231_v6  ;;  %v1846_v11 = vand.u32 4294901760, %v230_v8  ;;  %v245_v12 = vld [vmem:[%s2629_s1 + $0xe0] sm:$0xff]  ;;  %v244_v30 = vld [vmem:[%s2629_s1 + $0xd8] sm:$0xff] }
  0x16   : > { %v229_v13 = vld [vmem:[%s2629_s1 + $0x60] sm:$0xff]  ;;  %v1855_v14 = vsub.f32 %v248_v0, %v1826_v3  ;;  %v1861_v16 = vsub.f32 %v247_v2, %v1830_v5  ;;  %v1863_v17 = vand.u32 4294901760, %v245_v12  ;;  %1380 = vmatprep.subr.mxu0 %v1826_v3  ;;  %v1870_v19 = vsub.f32 %v246_v7, %v1844_v10  ;;  %v228_v31 = vld [vmem:[%s2629_s1 + $0x58] sm:$0xff]  ;;  %v243_v38 = vld [vmem:[%s2629_s1 + $0xd0] sm:$0xff]  ;;  %s134_s6 = sand.u32 1, %s1739_s10   ;;  %s1379_s14 = sshll.u32 %s1789_s13, 9 }
  0x17   : > { %v1858_v15 = vsub.f32 %v232_v1, %v1828_v4  ;;  %s1644_s16 = smul.u32 80, %s138_s5  ;;  %v1867_v18 = vsub.f32 %v231_v6, %v1842_v9  ;;  %v1873_v20 = vsub.f32 %v230_v8, %v1846_v11  ;;  %v1875_v21 = vand.u32 4294901760, %v229_v13  ;;  %1381 = vmatpush3.msra.mxu0 %v1828_v4  ;;  %v227_v43 = vld [vmem:[%s2629_s1 + $0x50] sm:$0xff]  ;;  %v242_v44 = vld [vmem:[%s2629_s1 + $0xc8] sm:$0xff]  ;;  %v241_v56 = vld [vmem:[%s2629_s1 + $0xc0] sm:$0xff]  ;;  %s1364_s7 = sshll.u32 %s134_s6, 5 }
  0x18   : > { %2722 = vst [vmem:[#allocation6_spill] sm:$0xff] %v1855_v14  ;;  %v2651_v22 = vand.u32 4294901760, %v1855_v14  ;;  %v2649_v24 = vand.u32 4294901760, %v1861_v16  ;;  %v1882_v25 = vsub.f32 %v245_v12, %v1863_v17  ;;  %1382 = vmatprep.subr.mxu0 %v1830_v5  ;;  %v2642_v27 = vand.u32 4294901760, %v1870_v19  ;;  %v226_v50 = vld [vmem:[%s2629_s1 + $0x48] sm:$0xff]  ;;  %v225_v63 = vld [vmem:[%s2629_s1 + $0x40] sm:$0xff] }
  0x19   : > { %v2650_v23 = vand.u32 4294901760, %v1858_v15  ;;  %s1888_s22 = scalar_lea.vmem %s2628_s0, %s1644_s16  ;;  %v2643_v26 = vand.u32 4294901760, %v1867_v18  ;;  %v2641_v28 = vand.u32 4294901760, %v1873_v20  ;;  %v1894_v29 = vsub.f32 %v229_v13, %v1875_v21  ;;  %1383 = vmatpush3.msra.mxu0 %v1842_v9  ;;  %s136_s8 = scalar_lea.vmem [#allocation3], %s1364_s7 }
  0x1a   : > { %v1370_v32 = vld [vmem:[%s1888_s22 + $0x11] sm:$0xff]  ;;  %v1905_v33 = vld [vmem:[%s1888_s22 + $0x21] sm:$0xff]  ;;  %v522_v34 = vsub.f32 %v1855_v14, %v2651_v22  ;;  %v529_v36 = vsub.f32 %v1861_v16, %v2649_v24  ;;  %v2640_v37 = vand.u32 4294901760, %v1882_v25  ;;  %1384 = vmatprep.subr.mxu0 %v1844_v10  ;;  %v1930_v40 = vsub.f32 %v1870_v19, %v2642_v27  ;;  %s1298_s16 = sshll.u32 %s136_s8, 4  ;;  %s2588_s13 = scalar_lea.sflag [#allocation4], %s134_s6  ;;  %s2583_s16 = int_to_ptr.vmem [resolvable:$true] %s1298_s16 }
  0x1b   : > { %v410_v35 = vsub.f32 %v1858_v15, %v2650_v23  ;;  %193 = vrot.lane.b32.xlu0 %v1370_v32, %s1749_s29  ;;  %195 = vrot.lane.b32.xlu1 %v1905_v33, %s1749_s29  ;;  %v417_v39 = vsub.f32 %v1867_v18, %v2643_v26  ;;  %v1935_v41 = vsub.f32 %v1873_v20, %v2641_v28  ;;  %v2639_v42 = vand.u32 4294901760, %v1894_v29  ;;  %v151_v45 = vld [vmem:[%s1888_s22 + $0x1] sm:$0xff]  ;;  %v1366_v51 = vld [vmem:[%s1888_s22 + $0x10] sm:$0xff]  ;;  %s1687_s23 = scalar_lea.vmem %s2583_s16, 512  ;;  %s1750_s24 = smov [#allocation3]  }
  0x1c   : > { %v523_v46 = vand.u32 4294901760, %v522_v34  ;;  %v530_v48 = vand.u32 4294901760, %v529_v36  ;;  %v1948_v49 = vsub.f32 %v1882_v25, %v2640_v37  ;;  %1385 = vmatpush3.msra.mxu0 %v1846_v11  ;;  %v537_v53 = vand.u32 4294901760, %v1930_v40  ;;  %181 = vst.msk [vmem:[#allocation2 + $0x8] sm:$0xff] %vm146_vm0, %v1366_v51  ;;  %v1367_v57 = vld [vmem:[%s1888_s22 + $0x20] sm:$0xff]  ;;  %148 = vst.msk [vmem:[#allocation2 + $0x10] sm:$0xff] %vm146_vm0, %v1366_v51  ;;  %p1688_p11 = scmp.ne.s32.totalorder %s2583_s16, %s1687_s23 }
  0x1d   : > { %v411_v47 = vand.u32 4294901760, %v410_v35  ;;  %v418_v52 = vand.u32 4294901760, %v417_v39  ;;  %v425_v54 = vand.u32 4294901760, %v1935_v41  ;;  %v1960_v55 = vsub.f32 %v1894_v29, %v2639_v42  ;;  %1386 = vmatprep.subr.mxu0 %v1863_v17  ;;  %v142_v58 = vld [vmem:[%s1888_s22] sm:$0xff]  ;;  %182 = vst.msk [vmem:[#allocation2 + $0x18] sm:$0xff] %vm146_vm0, %v1367_v57  ;;  %149 = vst.msk [vmem:[#allocation2 + $0x20] sm:$0xff] %vm146_vm0, %v1367_v57 }
  0x1e   : > { %1424 = vmatprep.subr.mxu1 %v523_v46  ;;  %v544_v59 = vand.u32 4294901760, %v1948_v49  ;;  %v1971_v60 = vand.u32 4294901760, %v244_v30  ;;  %v1973_v61 = vand.u32 4294901760, %v228_v31  ;;  %v1975_v62 = vand.u32 4294901760, %v243_v38  ;;  %1387 = vmatpush3.msra.mxu0 %v1875_v21  ;;  %147 = vst.msk [vmem:[#allocation2] sm:$0xff] %vm146_vm0, %v142_v58  ;;  %v1372_v7 = vld [vmem:[%s1888_s22 + $0x31] sm:$0xff]  ;;  %p1689_p12 = pnand %p1688_p11, %p1806_p5 }
  0x1f   : > { %159 = vrot.lane.b32.xlu0 %v151_v45, %s1749_s29  ;;  %161 = vrot.lane.b32.xlu1 %v1370_v32, %s1749_s29  ;;  %v432_v0 = vand.u32 4294901760, %v1960_v55  ;;  %v1987_v1 = vand.u32 4294901760, %v227_v43  ;;  %v1989_v2 = vand.u32 4294901760, %v242_v44  ;;  %v1991_v6 = vand.u32 4294901760, %v226_v50  ;;  %v1368_v36 = vld [vmem:[%s1888_s22 + $0x30] sm:$0xff]  ;;  %v240_v58 = vld [vmem:[%s2629_s1 + $0xb8] sm:$0xff] }
  0x20   : > { %1425 = vmatpush3.msra.mxu1 %v411_v47  ;;  %v1995_v8 = vsub.f32 %v244_v30, %v1971_v60  ;;  %v1998_v12 = vsub.f32 %v228_v31, %v1973_v61  ;;  %v2001_v13 = vsub.f32 %v243_v38, %v1975_v62  ;;  %v2003_v32 = vand.u32 4294901760, %v241_v56  ;;  %1388 = vmatprep.subr.mxu0 %v1971_v60  ;;  %p1690_p13 = pneg %p1689_p12  ;;  %s1691_s25 = sshll.u32 %s1750_s24, 4  ;;  %s1692_s25 = int_to_ptr.vmem [resolvable:$false] %s1691_s25 }
  0x21   : > { %1426 = vmatprep.subr.mxu1 %v530_v48  ;;  %v2007_v34 = vsub.f32 %v227_v43, %v1987_v1  ;;  %v2010_v35 = vsub.f32 %v242_v44, %v1989_v2  ;;  %v2013_v30 = vsub.f32 %v226_v50, %v1991_v6  ;;  %v2015_v31 = vand.u32 4294901760, %v225_v63  ;;  %1389 = vmatpush3.msra.mxu0 %v1973_v61  ;;  %v1369_v43 = vld [vmem:[%s1888_s22 + $0x40] sm:$0xff]  ;;  %s1693_s26 = scalar_lea.vmem %s1692_s25, 1024  ;;  %p1694_p0 = scmp.lt.s32.totalorder %s2583_s16, %s1692_s25 }
  0x22   : > { %1427 = vmatpush3.msra.mxu1 %v418_v52  ;;  %v2637_v38 = vand.u32 4294901760, %v1995_v8  ;;  %v2636_v39 = vand.u32 4294901760, %v1998_v12  ;;  %v2635_v40 = vand.u32 4294901760, %v2001_v13  ;;  %v2023_v41 = vsub.f32 %v241_v56, %v2003_v32  ;;  %1390 = vmatprep.subr.mxu0 %v1975_v62  ;;  %183 = vst.msk [vmem:[#allocation2 + $0x28] sm:$0xff] %vm146_vm0, %v1368_v36  ;;  %150 = vst.msk [vmem:[#allocation2 + $0x30] sm:$0xff] %vm146_vm0, %v1368_v36  ;;  %v1373_v48 = vld [vmem:[%s1888_s22 + $0x41] sm:$0xff]  ;;  %s2581_s22 = scalar_lea.hbm %s2630_s2, %s1379_s14  ;;  %p1695_p1 = scmp.lt.s32.totalorder %s1693_s26, %s1687_s23 }
  0x23   : > { %197 = vrot.lane.b32.xlu0 %v1372_v7, %s1749_s29  ;;  %163 = vrot.lane.b32.xlu1 %v1905_v33, %s1749_s29  ;;  %v2633_v44 = vand.u32 4294901760, %v2007_v34  ;;  %v2632_v45 = vand.u32 4294901760, %v2010_v35  ;;  %v2631_v46 = vand.u32 4294901760, %v2013_v30  ;;  %v2036_v47 = vsub.f32 %v225_v63, %v2015_v31  ;;  %184 = vst.msk [vmem:[#allocation2 + $0x38] sm:$0xff] %vm146_vm0, %v1369_v43  ;;  %v239_v63 = vld [vmem:[%s2629_s1 + $0xb0] sm:$0xff] }
  0x24   : > { %1428 = vmatprep.subr.mxu1 %v537_v53  ;;  %v550_v49 = vsub.f32 %v1995_v8, %v2637_v38  ;;  %v438_v33 = vsub.f32 %v1998_v12, %v2636_v39  ;;  %v557_v50 = vsub.f32 %v2001_v13, %v2635_v40  ;;  %v2634_v51 = vand.u32 4294901760, %v2023_v41  ;;  %1391 = vmatpush3.msra.mxu0 %v1987_v1  ;;  %v222_v40 = vld [vmem:[%s2629_s1 + $0x28] sm:$0xff]  ;;  %p1696_p2 = por %p1695_p1, %p1694_p0 }
  0x25   : > { %2723 = vst [vmem:[#allocation7_spill] sm:$0xff] %v2036_v47  ;;  %1429 = vmatpush3.msra.mxu1 %v425_v54  ;;  %v445_v52 = vsub.f32 %v2007_v34, %v2633_v44  ;;  %v564_v53 = vsub.f32 %v2010_v35, %v2632_v45  ;;  %v452_v56 = vsub.f32 %v2013_v30, %v2631_v46  ;;  %v2638_v57 = vand.u32 4294901760, %v2036_v47  ;;  %v224_v54 = vld [vmem:[%s2629_s1 + $0x38] sm:$0xff]  ;;  %v223_v45 = vld [vmem:[%s2629_s1 + $0x30] sm:$0xff]  ;;  %v238_v44 = vld [vmem:[%s2629_s1 + $0xa8] sm:$0xff] }
  0x26   : > { %1392 = vmatprep.subr.mxu0 %v1989_v2  ;;  %1430 = vmatprep.subr.mxu1 %v544_v59  ;;  %v551_v36 = vand.u32 4294901760, %v550_v49  ;;  %v439_v43 = vand.u32 4294901760, %v438_v33  ;;  %v571_v46 = vsub.f32 %v2023_v41, %v2634_v51  ;;  %v558_v59 = vand.u32 4294901760, %v557_v50  ;;  %v237_v50 = vld [vmem:[%s2629_s1 + $0xa0] sm:$0xff]  ;;  %p1697_p3 = pnand %p1696_p2, %p1690_p13 }
  0x27   : > { %1393 = vmatpush3.msra.mxu0 %v1991_v6  ;;  %199 = vrot.lane.b32.xlu0 %v1373_v48, %s1749_s29  ;;  %v446_v49 = vand.u32 4294901760, %v445_v52  ;;  %v565_v33 = vand.u32 4294901760, %v564_v53  ;;  %v459_v51 = vsub.f32 %v2036_v47, %v2638_v57  ;;  %v453_v39 = vand.u32 4294901760, %v452_v56  ;;  %v221_v52 = vld [vmem:[%s2629_s1 + $0x20] sm:$0xff] }
  0x28   : > { %165 = vrot.lane.b32.xlu1 %v1372_v7, %s1749_s29  ;;  %1431 = vmatpush3.msra.mxu1 %v432_v0  ;;  %v2091_v38 = vand.u32 4294901760, %v240_v58  ;;  %v2093_v48 = vand.u32 4294901760, %v224_v54  ;;  %v2095_v7 = vand.u32 4294901760, %v239_v63  ;;  %v572_v55 = vand.u32 4294901760, %v571_v46 }
  0x29   : > { %1394 = vmatprep.subr.mxu0 %v2003_v32  ;;  %1432 = vmatprep.subr.mxu1 %v551_v36  ;;  %v460_v0 = vand.u32 4294901760, %v459_v51  ;;  %v2104_v53 = vand.u32 4294901760, %v223_v45  ;;  %v2106_v56 = vand.u32 4294901760, %v238_v44  ;;  %v2118_v28 = vand.u32 4294901760, %v222_v40 }
  0x2a   : > { %1395 = vmatpush3.msra.mxu0 %v2015_v31  ;;  %1433 = vmatpush3.msra.mxu1 %v439_v43  ;;  %v2110_v57 = vsub.f32 %v240_v58, %v2091_v38  ;;  %v2113_v42 = vsub.f32 %v224_v54, %v2093_v48  ;;  %v2116_v37 = vsub.f32 %v239_v63, %v2095_v7  ;;  %v2127_v36 = vand.u32 4294901760, %v237_v50 }
  0x2b   : > { %1396 = vmatprep.subr.mxu0 %v2091_v38  ;;  %1434 = vmatprep.subr.mxu1 %v558_v59  ;;  %v2122_v46 = vsub.f32 %v223_v45, %v2104_v53  ;;  %v2125_v51 = vsub.f32 %v238_v44, %v2106_v56  ;;  %v2129_v58 = vand.u32 4294901760, %v221_v52  ;;  %v2136_v59 = vsub.f32 %v222_v40, %v2118_v28 }
  0x2c   : > { %2724 = vst [vmem:[#allocation8_spill] sm:$0xff] %v2110_v57  ;;  %2725 = vst [vmem:[#allocation9_spill] sm:$0xff] %v2113_v42  ;;  %1397 = vmatpush3.msra.mxu0 %v2093_v48  ;;  %1435 = vmatpush3.msra.mxu1 %v446_v49  ;;  %v2644_v54 = vand.u32 4294901760, %v2110_v57  ;;  %v2645_v63 = vand.u32 4294901760, %v2113_v42  ;;  %v2646_v43 = vand.u32 4294901760, %v2116_v37  ;;  %v2142_v27 = vsub.f32 %v237_v50, %v2127_v36 }
  0x2d   : > { %2726 = vst [vmem:[#allocation10_spill] sm:$0xff] %v2116_v37  ;;  %2727 = vst [vmem:[#allocation11_spill] sm:$0xff] %v2122_v46  ;;  %1398 = vmatprep.subr.mxu0 %v2095_v7  ;;  %1436 = vmatprep.subr.mxu1 %v565_v33  ;;  %v2647_v44 = vand.u32 4294901760, %v2122_v46  ;;  %v2648_v45 = vand.u32 4294901760, %v2125_v51  ;;  %v2145_v49 = vsub.f32 %v221_v52, %v2129_v58  ;;  %v2656_v50 = vand.u32 4294901760, %v2136_v59 }
  0x2e   : > { %2728 = vst [vmem:[#allocation12_spill] sm:$0xff] %v2125_v51  ;;  %2729 = vst [vmem:[#allocation13_spill] sm:$0xff] %v2129_v58  ;;  %1399 = vmatpush3.msra.mxu0 %v2104_v53  ;;  %1437 = vmatpush3.msra.mxu1 %v453_v39  ;;  %v578_v40 = vsub.f32 %v2110_v57, %v2644_v54  ;;  %v466_v33 = vsub.f32 %v2113_v42, %v2645_v63  ;;  %v219_v63 = vld [vmem:[%s2629_s1 + $0x10] sm:$0xff]  ;;  %v234_v54 = vld [vmem:[%s2629_s1 + $0x88] sm:$0xff]  ;;  %vm171_vm1 = vcmask 1048064   ;;  %vm1279_vm2 = vcmask 261120  }
  0x2f   : > { %2730 = vst [vmem:[#allocation14_spill] sm:$0xff] %v2136_v59  ;;  %2731 = vst [vmem:[#allocation15_spill] sm:$0xff] %v2142_v27  ;;  %v585_v26 = vsub.f32 %v2116_v37, %v2646_v43  ;;  %1400 = vmatprep.subr.mxu0 %v2106_v56  ;;  %1438 = vmatprep.subr.mxu1 %v572_v55  ;;  %v473_v39 = vsub.f32 %v2122_v46, %v2647_v44  ;;  %v236_v43 = vld [vmem:[%s2629_s1 + $0x98] sm:$0xff]  ;;  %v235_v44 = vld [vmem:[%s2629_s1 + $0x90] sm:$0xff]  ;;  %v2209_v42 = vand.u32 4294901760, %v219_v63 }
  0x30   : > { %2732 = vst [vmem:[#allocation16_spill] sm:$0xff] %v2145_v49  ;;  %v592_v52 = vsub.f32 %v2125_v51, %v2648_v45  ;;  %v220_v55 = vld [vmem:[%s2629_s1 + $0x18] sm:$0xff]  ;;  %1401 = vmatpush3.msra.mxu0 %v2118_v28  ;;  %1439 = vmatpush3.msra.mxu1 %v460_v0  ;;  %v579_v45 = vand.u32 4294901760, %v578_v40  ;;  %v467_v24 = vand.u32 4294901760, %v466_v33  ;;  %v480_v22 = vsub.f32 %v2136_v59, %v2656_v50  ;;  %v218_v50 = vld [vmem:[%s2629_s1 + $0x8] sm:$0xff] }
  0x31   : > { %v586_v23 = vand.u32 4294901760, %v585_v26  ;;  %1402 = vmatprep.subr.mxu0 %v2127_v36  ;;  %v474_v51 = vand.u32 4294901760, %v473_v39  ;;  %v2733_v0 = vand.u32 4294901760, %v2142_v27  ;;  %v2734_v40 = vand.u32 4294901760, %v2145_v49  ;;  %2736 = vst [vmem:[#allocation18_spill] sm:$0xff] %v2209_v42 }
  0x32   : > { %v593_v46 = vand.u32 4294901760, %v592_v52  ;;  %1403 = vmatpush3.msra.mxu0 %v2129_v58  ;;  %1440 = vmatprep.subr.mxu1 %v579_v45  ;;  %v481_v59 = vand.u32 4294901760, %v480_v22  ;;  %v2197_v37 = vand.u32 4294901760, %v236_v43  ;;  %v2199_v39 = vand.u32 4294901760, %v220_v55 }
  0x33   : > { %v599_v26 = vsub.f32 %v2142_v27, %v2733_v0  ;;  %v487_v33 = vsub.f32 %v2145_v49, %v2734_v40  ;;  %v2201_v52 = vand.u32 4294901760, %v235_v44  ;;  %v233_v0 = vld [vmem:[%s2629_s1 + $0x80] sm:$0xff]  ;;  %1441 = vmatpush3.msra.mxu1 %v467_v24  ;;  %v2211_v22 = vand.u32 4294901760, %v234_v54 }
  0x34   : > { %2735 = vst [vmem:[#allocation17_spill] sm:$0xff] %v2197_v37  ;;  %v217_v40 = vld [vmem:[%s2629_s1] sm:$0xff]  ;;  %1442 = vmatprep.subr.mxu1 %v586_v23  ;;  %v2214_v45 = vsub.f32 %v236_v43, %v2197_v37  ;;  %v2217_v57 = vsub.f32 %v220_v55, %v2199_v39  ;;  %v2222_v47 = vand.u32 4294901760, %v218_v50  ;;  %1404 = vmatprep.subr.mxu0 %v2197_v37  ;;  %v2231_v23 = vand.u32 4294901760, %v233_v0 }
  0x35   : > { %v600_v49 = vand.u32 4294901760, %v599_v26  ;;  %v488_v27 = vand.u32 4294901760, %v487_v33  ;;  %2737 = vst [vmem:[#allocation19_spill] sm:$0xff] %v2211_v22  ;;  %v2220_v58 = vsub.f32 %v235_v44, %v2201_v52  ;;  %1443 = vmatpush3.msra.mxu1 %v474_v51  ;;  %v2226_v24 = vsub.f32 %v219_v63, %v2209_v42  ;;  %1405 = vmatpush3.msra.mxu0 %v2199_v39 }
  0x36   : > { %2738 = vst [vmem:[#allocation20_spill] sm:$0xff] %v2214_v45  ;;  %2739 = vst [vmem:[#allocation21_spill] sm:$0xff] %v2217_v57  ;;  %v2229_v26 = vsub.f32 %v234_v54, %v2211_v22  ;;  %v2233_v43 = vand.u32 4294901760, %v217_v40  ;;  %1444 = vmatprep.subr.mxu1 %v593_v46  ;;  %v2675_v44 = vand.u32 4294901760, %v2214_v45  ;;  %v2678_v55 = vand.u32 4294901760, %v2217_v57  ;;  %1406 = vmatprep.subr.mxu0 %v2201_v52 }
  0x37   : > { %2740 = vst [vmem:[#allocation22_spill] sm:$0xff] %v2220_v58  ;;  %v2679_v33 = vand.u32 4294901760, %v2220_v58  ;;  %v2240_v51 = vsub.f32 %v218_v50, %v2222_v47  ;;  %1445 = vmatpush3.msra.mxu1 %v481_v59  ;;  %v2684_v54 = vand.u32 4294901760, %v2226_v24  ;;  %v2246_v37 = vsub.f32 %v233_v0, %v2231_v23  ;;  %1407 = vmatpush3.msra.mxu0 %v2209_v42 }
  0x38   : > { %2741 = vst [vmem:[#allocation23_spill] sm:$0xff] %v2229_v26  ;;  %v2249_v46 = vsub.f32 %v217_v40, %v2233_v43  ;;  %1446 = vmatprep.subr.mxu1 %v600_v49  ;;  %v606_v50 = vsub.f32 %v2214_v45, %v2675_v44  ;;  %v494_v59 = vsub.f32 %v2217_v57, %v2678_v55  ;;  %v2745_v40 = vand.u32 4294901760, %v2229_v26 }
  0x39   : > { %2742 = vst [vmem:[#allocation24_spill] sm:$0xff] %v2240_v51  ;;  %2743 = vst [vmem:[#allocation25_spill] sm:$0xff] %v2246_v37  ;;  %v613_v63 = vsub.f32 %v2220_v58, %v2679_v33  ;;  %1408 = vmatprep.subr.mxu0 %v2211_v22  ;;  %1447 = vmatpush3.msra.mxu1 %v488_v27  ;;  %v501_v49 = vsub.f32 %v2226_v24, %v2684_v54  ;;  %v2688_v45 = vand.u32 4294901760, %v2246_v37 }
  0x3a   : > { %2744 = vst [vmem:[#allocation26_spill] sm:$0xff] %v2249_v46  ;;  %v620_v44 = vsub.f32 %v2229_v26, %v2745_v40  ;;  %v2687_v55 = vand.u32 4294901760, %v2249_v46  ;;  %1409 = vmatpush3.msra.mxu0 %v2222_v47  ;;  %v607_v33 = vand.u32 4294901760, %v606_v50  ;;  %v495_v58 = vand.u32 4294901760, %v494_v59 }
  0x3b   : > { %v614_v0 = vand.u32 4294901760, %v613_v63  ;;  %v2746_v57 = vand.u32 4294901760, %v2240_v51  ;;  %1410 = vmatprep.subr.mxu0 %v2231_v23  ;;  %v502_v54 = vand.u32 4294901760, %v501_v49  ;;  %v627_v40 = vsub.f32 %v2246_v37, %v2688_v45 }
  0x3c   : > { %v515_v26 = vsub.f32 %v2249_v46, %v2687_v55  ;;  %1411 = vmatpush3.msra.mxu0 %v2233_v43  ;;  %1448 = vmatprep.subr.mxu1 %v607_v33  ;;  %v621_v50 = vand.u32 4294901760, %v620_v44 }
  0x3d   : > { %v508_v27 = vsub.f32 %v2240_v51, %v2746_v57  ;;  %1468 = vmatprep.subr.mxu0 %v1855_v14  ;;  %1449 = vmatpush3.msra.mxu1 %v495_v58  ;;  %v628_v57 = vand.u32 4294901760, %v627_v40 }
  0x3e   : > { %1450 = vmatprep.subr.mxu1 %v614_v0  ;;  %v516_v59 = vand.u32 4294901760, %v515_v26 }
  0x3f   : > { %v509_v63 = vand.u32 4294901760, %v508_v27  ;;  %1451 = vmatpush3.msra.mxu1 %v502_v54 }
  0x40   : > { %1452 = vmatprep.subr.mxu1 %v621_v50 }
  0x41   : > { %1453 = vmatpush3.msra.mxu1 %v509_v63 }
  0x42   : > { %1454 = vmatprep.subr.mxu1 %v628_v57 }
  0x43   : > { %1455 = vmatpush3.msra.mxu1 %v516_v59 }
  0x44   : > { %1512 = vmatprep.subr.mxu1 %v1826_v3 }
  0x8d   : > { %v194_v49 = vpop.permute.xlu0 %193  ;;  %v196_v55 = vpop.permute.xlu1 %195 }
  0x8e   : > { %205 = vst.msk [vmem:[#allocation2 + $0x8] sm:$0xff] %vm171_vm1, %v194_v49  ;;  %206 = vst.msk [vmem:[#allocation2 + $0x18] sm:$0xff] %vm171_vm1, %v196_v55 }
  0x91   : > { %v160_v44 = vpop.permute.xlu0 %159  ;;  %v162_v58 = vpop.permute.xlu1 %161 }
  0x92   : > { %172 = vst.msk [vmem:[#allocation2] sm:$0xff] %vm171_vm1, %v160_v44  ;;  %173 = vst.msk [vmem:[#allocation2 + $0x10] sm:$0xff] %vm171_vm1, %v162_v58 }
  0x95   : > { %v210_v26 = vld [vmem:[#allocation2 + $0x8] sm:$0xff]  ;;  %v198_v33 = vpop.permute.xlu0 %197  ;;  %v164_v54 = vpop.permute.xlu1 %163  ;;  %v212_v0 = vld [vmem:[#allocation2 + $0x18] sm:$0xff] }
  0x96   : > { %v2289_v27 = vand.u32 4294901760, %v210_v26  ;;  %207 = vst.msk [vmem:[#allocation2 + $0x28] sm:$0xff] %vm171_vm1, %v198_v33  ;;  %174 = vst.msk [vmem:[#allocation2 + $0x20] sm:$0xff] %vm171_vm1, %v164_v54  ;;  %v2293_v40 = vand.u32 4294901760, %v212_v0 }
  0x98   : > { %2747 = vst [vmem:[#allocation27_spill] sm:$0xff] %v2289_v27  ;;  %2748 = vst [vmem:[#allocation28_spill] sm:$0xff] %v2293_v40  ;;  %631 = vmatprep.mubr.f32.mxu1 %v2289_v27  ;;  %v2297_v55 = vsub.f32 %v210_v26, %v2289_v27  ;;  %v2300_v49 = vsub.f32 %v212_v0, %v2293_v40 }
  0x99   : > { %v200_v50 = vpop.permute.xlu0 %199  ;;  %v209_v63 = vld [vmem:[#allocation2] sm:$0xff]  ;;  %v211_v59 = vld [vmem:[#allocation2 + $0x10] sm:$0xff] }
  0x9a   : > { %v166_v57 = vpop.permute.xlu1 %165  ;;  %208 = vst.msk [vmem:[#allocation2 + $0x38] sm:$0xff] %vm171_vm1, %v200_v50  ;;  %v2303_v44 = vand.u32 4294901760, %v209_v63  ;;  %v2692_v58 = vand.u32 4294901760, %v2297_v55  ;;  %v2307_v33 = vand.u32 4294901760, %v211_v59 }
  0x9b   : > { %175 = vst.msk [vmem:[#allocation2 + $0x30] sm:$0xff] %vm171_vm1, %v166_v57 }
  0x9c   : > { %2749 = vst [vmem:[#allocation29_spill] sm:$0xff] %v2303_v44  ;;  %2750 = vst [vmem:[#allocation30_spill] sm:$0xff] %v2307_v33  ;;  %633 = vmatmul.mubr.f32.vlgmr.msra.gmra.mxu1 %v2303_v44  ;;  %v348_v26 = vsub.f32 %v2297_v55, %v2692_v58  ;;  %v2314_v54 = vsub.f32 %v209_v63, %v2303_v44  ;;  %v2317_v0 = vsub.f32 %v211_v59, %v2307_v33 }
  0x9d   : > { %1513 = vmatpush3.msra.mxu1 %v1828_v4  ;;  %638 = vmatprep.mubr.f32.mxu1 %v2293_v40  ;;  %v214_v50 = vld [vmem:[#allocation2 + $0x28] sm:$0xff]  ;;  %v213_v57 = vld [vmem:[#allocation2 + $0x20] sm:$0xff] }
  0x9e   : > { %1514 = vmatprep.subr.mxu1 %v1830_v5  ;;  %v349_v27 = vand.u32 4294901760, %v348_v26  ;;  %v2323_v14 = vand.u32 4294901760, %v214_v50  ;;  %v2701_v58 = vand.u32 4294901760, %v2314_v54  ;;  %v2326_v63 = vand.u32 4294901760, %v213_v57 }
  0x9f   : > { %1515 = vmatpush3.msra.mxu1 %v1842_v9  ;;  %v2753_v26 = vand.u32 4294901760, %v2300_v49 }
  0xa0   : > { %2751 = vst [vmem:[#allocation31_spill] sm:$0xff] %v2323_v14  ;;  %2752 = vst [vmem:[#allocation32_spill] sm:$0xff] %v2326_v63  ;;  %1516 = vmatprep.subr.mxu1 %v1844_v10  ;;  %350 = vmatprep.mubr.f32.mxu0 %v349_v27  ;;  %v354_v45 = vsub.f32 %v2314_v54, %v2701_v58  ;;  %v2335_v40 = vsub.f32 %v214_v50, %v2323_v14 }
  0xa1   : > { %640 = vmatmul.mubr.f32.gmra.mxu1 %v2307_v33  ;;  %v363_v44 = vsub.f32 %v2300_v49, %v2753_v26  ;;  %v216_v46 = vld [vmem:[#allocation2 + $0x38] sm:$0xff]  ;;  %v2342_v59 = vsub.f32 %v213_v57, %v2326_v63  ;;  %v2756_v33 = vand.u32 4294901760, %v2317_v0 }
  0xa2   : > { %v215_v37 = vld [vmem:[#allocation2 + $0x30] sm:$0xff]  ;;  %1517 = vmatpush3.msra.mxu1 %v1846_v11  ;;  %645 = vmatprep.mubr.f32.mxu1 %v2323_v14  ;;  %v355_v27 = vand.u32 4294901760, %v354_v45  ;;  %v2346_v58 = vand.u32 4294901760, %v216_v46  ;;  %v2708_v51 = vand.u32 4294901760, %v2335_v40 }
  0xa3   : > { %v2348_v50 = vand.u32 4294901760, %v215_v37  ;;  %1518 = vmatprep.subr.mxu1 %v1863_v17  ;;  %v369_v26 = vsub.f32 %v2317_v0, %v2756_v33  ;;  %v364_v45 = vand.u32 4294901760, %v363_v44  ;;  %v2709_v14 = vand.u32 4294901760, %v2342_v59 }
  0xa4   : > { %2754 = vst [vmem:[#allocation33_spill] sm:$0xff] %v2346_v58  ;;  %1519 = vmatpush3.msra.mxu1 %v1875_v21  ;;  %356 = vmatmul.mubr.f32.vlgmr.msra.gmra.mxu0 %v355_v27  ;;  %v2357_v57 = vsub.f32 %v216_v46, %v2346_v58  ;;  %v378_v27 = vsub.f32 %v2335_v40, %v2708_v51 }
  0xa5   : > { %2755 = vst [vmem:[#allocation34_spill] sm:$0xff] %v2348_v50  ;;  %1520 = vmatprep.subr.mxu1 %v1971_v60  ;;  %647 = vmatmul.mubr.f32.gmra.mxu1 %v2326_v63  ;;  %v2365_v33 = vsub.f32 %v215_v37, %v2348_v50  ;;  %v370_v46 = vand.u32 4294901760, %v369_v26  ;;  %v384_v37 = vsub.f32 %v2342_v59, %v2709_v14  ;;  %v2769_v63 = vld [vmem:[#allocation20_spill] sm:$0xff] }
  0xa6   : > { %1469 = vmatpush3.msra.mxu0 %v1858_v15  ;;  %1521 = vmatpush3.msra.mxu1 %v1973_v61  ;;  %v2713_v44 = vand.u32 4294901760, %v2357_v57  ;;  %v379_v51 = vand.u32 4294901760, %v378_v27 }
  0xa7   : > { %1470 = vmatprep.subr.mxu0 %v1861_v16  ;;  %1522 = vmatprep.subr.mxu1 %v1975_v62  ;;  %v2712_v26 = vand.u32 4294901760, %v2365_v33  ;;  %v385_v14 = vand.u32 4294901760, %v384_v37  ;;  %v2760_v37 = vld [vmem:[#allocation8_spill] sm:$0xff] }
  0xa8   : > { %1471 = vmatpush3.msra.mxu0 %v1867_v18  ;;  %1523 = vmatpush3.msra.mxu1 %v1987_v1 }
  0xa9   : > { %365 = vmatprep.mubr.f32.mxu0 %v364_v45  ;;  %652 = vmatprep.mubr.f32.mxu1 %v2346_v58  ;;  %v393_v45 = vsub.f32 %v2357_v57, %v2713_v44  ;;  %v2757_v58 = vand.u32 4294901760, %v2297_v55  ;;  %v2767_v44 = vld [vmem:[#allocation15_spill] sm:$0xff] }
  0xaa   : > { %1472 = vmatprep.subr.mxu0 %v1870_v19  ;;  %1524 = vmatprep.subr.mxu1 %v1989_v2 }
  0xab   : > { %371 = vmatmul.mubr.f32.gmra.mxu0 %v370_v46  ;;  %654 = vmatmul.mubr.f32.gmra.mxu1 %v2348_v50  ;;  %v399_v46 = vsub.f32 %v2365_v33, %v2712_v26  ;;  %v394_v27 = vand.u32 4294901760, %v393_v45  ;;  %v2761_v45 = vld [vmem:[#allocation17_spill] sm:$0xff]  ;;  %v2766_v26 = vld [vmem:[#allocation14_spill] sm:$0xff]  ;;  %v2768_v50 = vld [vmem:[#allocation16_spill] sm:$0xff] }
  0xac   : > { %1473 = vmatpush3.msra.mxu0 %v1873_v20  ;;  %1525 = vmatpush3.msra.mxu1 %v1991_v6 }
  0xad   : > { %1474 = vmatprep.subr.mxu0 %v1882_v25  ;;  %1526 = vmatprep.subr.mxu1 %v2003_v32 }
  0xae   : > { %923 = vmatprep.mubr.f32.mxu1 %v2757_v58  ;;  %1475 = vmatpush3.msra.mxu0 %v1894_v29  ;;  %v400_v58 = vand.u32 4294901760, %v399_v46  ;;  %v2762_v46 = vld [vmem:[#allocation9_spill] sm:$0xff] }
  0xaf   : > { %1527 = vmatpush3.msra.mxu1 %v2015_v31  ;;  %380 = vmatprep.mubr.f32.mxu0 %v379_v51  ;;  %v2759_v51 = vld [vmem:[#allocation13_spill] sm:$0xff] }
  0xb0   : > { %1476 = vmatprep.subr.mxu0 %v1995_v8  ;;  %1528 = vmatprep.subr.mxu1 %v2091_v38 }
  0xb1   : > { %386 = vmatmul.mubr.f32.gmra.mxu0 %v385_v14  ;;  %1529 = vmatpush3.msra.mxu1 %v2093_v48  ;;  %v2758_v14 = vld [vmem:[#allocation7_spill] sm:$0xff] }
  0xb2   : > { %1477 = vmatpush3.msra.mxu0 %v1998_v12  ;;  %1530 = vmatprep.subr.mxu1 %v2095_v7 }
  0xb3   : > { %1478 = vmatprep.subr.mxu0 %v2001_v13  ;;  %1531 = vmatpush3.msra.mxu1 %v2104_v53 }
  0xb4   : > { %1479 = vmatpush3.msra.mxu0 %v2007_v34  ;;  %395 = vmatprep.mubr.f32.mxu0 %v394_v27  ;;  %v2763_v27 = vld [vmem:[#allocation10_spill] sm:$0xff] }
  0xb5   : > { %1480 = vmatprep.subr.mxu0 %v2010_v35  ;;  %1532 = vmatprep.subr.mxu1 %v2106_v56 }
  0xb6   : > { %401 = vmatmul.mubr.f32.gmra.mxu0 %v400_v58  ;;  %1533 = vmatpush3.msra.mxu1 %v2118_v28  ;;  %v2765_v58 = vld [vmem:[#allocation12_spill] sm:$0xff] }
  0xb7   : > { %1481 = vmatpush3.msra.mxu0 %v2013_v30  ;;  %789 = vmatprep.mubr.f32.mxu0 %v2297_v55  ;;  %v2764_v55 = vld [vmem:[#allocation11_spill] sm:$0xff] }
  0xb8   : > { %1482 = vmatprep.subr.mxu0 %v2023_v41  ;;  %1534 = vmatprep.subr.mxu1 %v2127_v36 }
  0xb9   : > { %1483 = vmatpush3.msra.mxu0 %v2758_v14  ;;  %1535 = vmatpush3.msra.mxu1 %v2759_v51 }
  0xba   : > { %1484 = vmatprep.subr.mxu0 %v2760_v37  ;;  %1536 = vmatprep.subr.mxu1 %v2761_v45 }
  0xbb   : > { %1485 = vmatpush3.msra.mxu0 %v2762_v46  ;;  %1537 = vmatpush3.msra.mxu1 %v2199_v39 }
  0xbc   : > { %1486 = vmatprep.subr.mxu0 %v2763_v27  ;;  %1538 = vmatprep.subr.mxu1 %v2201_v52 }
  0xbd   : > { %1487 = vmatpush3.msra.mxu0 %v2764_v55  ;;  %1539 = vmatpush3.msra.mxu1 %v2209_v42  ;;  %v2770_v42 = vand.u32 4294901760, %v2314_v54 }
  0xbe   : > { %1488 = vmatprep.subr.mxu0 %v2765_v58  ;;  %1540 = vmatprep.subr.mxu1 %v2211_v22  ;;  %v2771_v22 = vld [vmem:[#allocation21_spill] sm:$0xff] }
  0xbf   : > { %1489 = vmatpush3.msra.mxu0 %v2766_v26  ;;  %1541 = vmatpush3.msra.mxu1 %v2222_v47  ;;  %v2772_v26 = vand.u32 4294901760, %v2300_v49 }
  0xc0   : > { %1490 = vmatprep.subr.mxu0 %v2767_v44  ;;  %1542 = vmatprep.subr.mxu1 %v2231_v23  ;;  %v2773_v44 = vld [vmem:[#allocation22_spill] sm:$0xff] }
  0xc1   : > { %1491 = vmatpush3.msra.mxu0 %v2768_v50  ;;  %1543 = vmatpush3.msra.mxu1 %v2233_v43 }
  0xc2   : > { %1492 = vmatprep.subr.mxu0 %v2769_v63  ;;  %927 = vmatmul.mubr.f32.vlgmr.msra.gmra.mxu1 %v2770_v42  ;;  %v2774_v63 = vld [vmem:[#allocation23_spill] sm:$0xff]  ;;  %v2775_v42 = vand.u32 4294901760, %v2317_v0 }
  0xc3   : > { %1600 = vmatprep.subr.mxu1 %v1826_v3  ;;  %1493 = vmatpush3.msra.mxu0 %v2771_v22  ;;  %v2776_v3 = vld [vmem:[#allocation24_spill] sm:$0xff] }
  0xc4   : > { %934 = vmatprep.mubr.f32.mxu1 %v2772_v26  ;;  %1601 = vmatpush3.msra.mxu1 %v1828_v4  ;;  %v2777_v26 = vand.u32 4294901760, %v2335_v40  ;;  %v2778_v4 = vld [vmem:[#allocation25_spill] sm:$0xff] }
  0xc5   : > { %1494 = vmatprep.subr.mxu0 %v2773_v44  ;;  %1602 = vmatprep.subr.mxu1 %v1830_v5  ;;  %v2779_v5 = vld [vmem:[#allocation26_spill] sm:$0xff] }
  0xc6   : > { %1495 = vmatpush3.msra.mxu0 %v2226_v24  ;;  %1603 = vmatpush3.msra.mxu1 %v1842_v9  ;;  %v2780_v9 = vand.u32 4294901760, %v2342_v59 }
  0xc7   : > { %1496 = vmatprep.subr.mxu0 %v2774_v63  ;;  %938 = vmatmul.mubr.f32.gmra.mxu1 %v2775_v42 }
  0xc8   : > { %1604 = vmatprep.subr.mxu1 %v1844_v10  ;;  %1497 = vmatpush3.msra.mxu0 %v2776_v3  ;;  %v2781_v10 = vld [vmem:[#allocation6_spill] sm:$0xff] }
  0xc9   : > { %945 = vmatprep.mubr.f32.mxu1 %v2777_v26  ;;  %1605 = vmatpush3.msra.mxu1 %v1846_v11  ;;  %v2782_v42 = vand.u32 4294901760, %v2781_v10  ;;  %v2783_v11 = vand.u32 4294901760, %v2357_v57 }
  0xca   : > { %1498 = vmatprep.subr.mxu0 %v2778_v4  ;;  %1606 = vmatprep.subr.mxu1 %v1863_v17  ;;  %v2784_v17 = vand.u32 4294901760, %v1858_v15  ;;  %v2788_v15 = vand.u32 4294901760, %v1870_v19  ;;  %v2793_v19 = vand.u32 4294901760, %v1995_v8  ;;  %v2800_v8 = vand.u32 4294901760, %v2758_v14 }
  0xcb   : > { %1499 = vmatpush3.msra.mxu0 %v2779_v5  ;;  %1607 = vmatpush3.msra.mxu1 %v1875_v21  ;;  %v2785_v21 = vand.u32 4294901760, %v1861_v16  ;;  %v2789_v16 = vand.u32 4294901760, %v1873_v20  ;;  %v2794_v20 = vand.u32 4294901760, %v1998_v12  ;;  %v2801_v12 = vand.u32 4294901760, %v2760_v37 }
  0xcc   : > { %792 = vmatmul.mubr.f32.vlgmr.msra.gmra.mxu0 %v2314_v54  ;;  %949 = vmatmul.mubr.f32.gmra.mxu1 %v2780_v9  ;;  %v2786_v54 = vand.u32 4294901760, %v1867_v18  ;;  %v2790_v18 = vld [vmem:[#allocation27_spill] sm:$0xff] }
  0xcd   : > { %1556 = vmatprep.subr.mxu0 %v2782_v42  ;;  %1608 = vmatprep.subr.mxu1 %v1971_v60  ;;  %v2787_v60 = vand.u32 4294901760, %v2365_v33 }
  0xce   : > { %798 = vmatprep.mubr.f32.mxu0 %v2300_v49  ;;  %956 = vmatprep.mubr.f32.mxu1 %v2783_v11  ;;  %v2822_v49 = vand.u32 4294901760, %v2776_v3 }
  0xcf   : > { %1557 = vmatpush3.msra.mxu0 %v2784_v17  ;;  %1609 = vmatpush3.msra.mxu1 %v1973_v61  ;;  %v2791_v61 = vand.u32 4294901760, %v1882_v25  ;;  %v2795_v25 = vand.u32 4294901760, %v2001_v13  ;;  %v2802_v13 = vand.u32 4294901760, %v2762_v46 }
  0xd0   : > { %1558 = vmatprep.subr.mxu0 %v2785_v21  ;;  %1610 = vmatprep.subr.mxu1 %v1975_v62  ;;  %v2792_v62 = vand.u32 4294901760, %v1894_v29  ;;  %v2796_v29 = vand.u32 4294901760, %v2007_v34  ;;  %v2805_v34 = vld [vmem:[#allocation18_spill] sm:$0xff] }
  0xd1   : > { %1559 = vmatpush3.msra.mxu0 %v2786_v54  ;;  %1611 = vmatpush3.msra.mxu1 %v1987_v1  ;;  %v2797_v1 = vand.u32 4294901760, %v2010_v35  ;;  %v2806_v35 = vand.u32 4294901760, %v2765_v58 }
  0xd2   : > { %801 = vmatmul.mubr.f32.gmra.mxu0 %v2317_v0  ;;  %960 = vmatmul.mubr.f32.gmra.mxu1 %v2787_v60  ;;  %v2823_v0 = vld [vmem:[#allocation31_spill] sm:$0xff] }
  0xd3   : > { %1560 = vmatprep.subr.mxu0 %v2788_v15  ;;  %1612 = vmatprep.subr.mxu1 %v1989_v2  ;;  %v2798_v2 = vand.u32 4294901760, %v2013_v30  ;;  %v2807_v30 = vld [vmem:[#allocation19_spill] sm:$0xff] }
  0xd4   : > { %807 = vmatprep.mubr.f32.mxu0 %v2335_v40  ;;  %1561 = vmatpush3.msra.mxu0 %v2789_v16  ;;  %v2820_v40 = vand.u32 4294901760, %v2774_v63  ;;  %v2827_v63 = vld [vmem:[#allocation33_spill] sm:$0xff] }
  0xd5   : > { %1613 = vmatpush3.msra.mxu1 %v1991_v6  ;;  %1251 = vmatprep.mubr.f32.mxu1 %v2790_v18  ;;  %v2799_v6 = vand.u32 4294901760, %v2023_v41  ;;  %v2810_v41 = vld [vmem:[#allocation15_spill] sm:$0xff] }
  0xd6   : > { %1562 = vmatprep.subr.mxu0 %v2791_v61  ;;  %1614 = vmatprep.subr.mxu1 %v2003_v32  ;;  %v2804_v32 = vand.u32 4294901760, %v2764_v55 }
  0xd7   : > { %1563 = vmatpush3.msra.mxu0 %v2792_v62  ;;  %1615 = vmatpush3.msra.mxu1 %v2015_v31  ;;  %v2808_v31 = vld [vmem:[#allocation14_spill] sm:$0xff] }
  0xd8   : > { %810 = vmatmul.mubr.f32.gmra.mxu0 %v2342_v59  ;;  %1564 = vmatprep.subr.mxu0 %v2793_v19  ;;  %v2825_v59 = vand.u32 4294901760, %v2779_v5 }
  0xd9   : > { %1616 = vmatprep.subr.mxu1 %v2091_v38  ;;  %816 = vmatprep.mubr.f32.mxu0 %v2357_v57  ;;  %v2809_v38 = vand.u32 4294901760, %v2808_v31 }
  0xda   : > { %1565 = vmatpush3.msra.mxu0 %v2794_v20  ;;  %1617 = vmatpush3.msra.mxu1 %v2093_v48  ;;  %v2811_v48 = vand.u32 4294901760, %v2810_v41 }
  0xdb   : > { %1566 = vmatprep.subr.mxu0 %v2795_v25  ;;  %1618 = vmatprep.subr.mxu1 %v2095_v7  ;;  %v2812_v7 = vand.u32 4294901760, %v2768_v50  ;;  %v2828_v50 = vld [vmem:[#allocation34_spill] sm:$0xff] }
  0xdc   : > { %1567 = vmatpush3.msra.mxu0 %v2796_v29  ;;  %1619 = vmatpush3.msra.mxu1 %v2104_v53  ;;  %v2813_v53 = vld [vmem:[#allocation20_spill] sm:$0xff] }
  0xdd   : > { %819 = vmatmul.mubr.f32.gmra.mxu0 %v2365_v33  ;;  %1568 = vmatprep.subr.mxu0 %v2797_v1 }
  0xde   : > { %1620 = vmatprep.subr.mxu1 %v2106_v56  ;;  %1569 = vmatpush3.msra.mxu0 %v2798_v2  ;;  %v2814_v56 = vand.u32 4294901760, %v2813_v53 }
  0xdf   : > { %1126 = vmatprep.mubr.f32.mxu0 %v2790_v18  ;;  %1621 = vmatpush3.msra.mxu1 %v2118_v28  ;;  %v2803_v28 = vand.u32 4294901760, %v2763_v27 }
  0xe0   : > { %1570 = vmatprep.subr.mxu0 %v2799_v6  ;;  %1622 = vmatprep.subr.mxu1 %v2127_v36  ;;  %v2815_v36 = vld [vmem:[#allocation29_spill] sm:$0xff] }
  0xe1   : > { %1571 = vmatpush3.msra.mxu0 %v2800_v8  ;;  %1623 = vmatpush3.msra.mxu1 %v2759_v51 }
  0xe2   : > { %1572 = vmatprep.subr.mxu0 %v2801_v12  ;;  %1624 = vmatprep.subr.mxu1 %v2761_v45 }
  0xe3   : > { %1573 = vmatpush3.msra.mxu0 %v2802_v13  ;;  %1625 = vmatpush3.msra.mxu1 %v2199_v39  ;;  %v2816_v39 = vand.u32 4294901760, %v2771_v22  ;;  %v2824_v22 = vand.u32 4294901760, %v2778_v4 }
  0xe4   : > { %1574 = vmatprep.subr.mxu0 %v2803_v28  ;;  %1626 = vmatprep.subr.mxu1 %v2201_v52  ;;  %v2817_v52 = vld [vmem:[#allocation28_spill] sm:$0xff] }
  0xe5   : > { %1575 = vmatpush3.msra.mxu0 %v2804_v32  ;;  %1627 = vmatpush3.msra.mxu1 %v2805_v34 }
  0xe6   : > { %1576 = vmatprep.subr.mxu0 %v2806_v35  ;;  %1628 = vmatprep.subr.mxu1 %v2807_v30 }
  0xe7   : > { %1577 = vmatpush3.msra.mxu0 %v2809_v38  ;;  %1629 = vmatpush3.msra.mxu1 %v2222_v47  ;;  %v2818_v47 = vand.u32 4294901760, %v2773_v44 }
  0xe8   : > { %1578 = vmatprep.subr.mxu0 %v2811_v48  ;;  %1630 = vmatprep.subr.mxu1 %v2231_v23  ;;  %v2819_v23 = vand.u32 4294901760, %v2226_v24  ;;  %v2826_v24 = vld [vmem:[#allocation32_spill] sm:$0xff] }
  0xe9   : > { %1579 = vmatpush3.msra.mxu0 %v2812_v7  ;;  %1631 = vmatpush3.msra.mxu1 %v2233_v43  ;;  %v2821_v43 = vld [vmem:[#allocation30_spill] sm:$0xff] }
  0xea   : > { %1580 = vmatprep.subr.mxu0 %v2814_v56  ;;  %1253 = vmatmul.mubr.f32.vlgmr.msra.gmra.mxu1 %v2815_v36 }
  0xeb   : > { %1581 = vmatpush3.msra.mxu0 %v2816_v39  ;;  %1258 = vmatprep.mubr.f32.mxu1 %v2817_v52 }
  0xec   : > { %1582 = vmatprep.subr.mxu0 %v2818_v47 }
  0xed   : > { %1583 = vmatpush3.msra.mxu0 %v2819_v23 }
  0xee   : > { %1584 = vmatprep.subr.mxu0 %v2820_v40  ;;  %1260 = vmatmul.mubr.f32.gmra.mxu1 %v2821_v43 }
  0xef   : > { %1585 = vmatpush3.msra.mxu0 %v2822_v49  ;;  %1265 = vmatprep.mubr.f32.mxu1 %v2823_v0 }
  0xf0   : > { %1586 = vmatprep.subr.mxu0 %v2824_v22 }
  0xf1   : > { %1587 = vmatpush3.msra.mxu0 %v2825_v59 }
  0xf2   : > { %1128 = vmatmul.mubr.f32.vlgmr.msra.gmra.mxu0 %v2815_v36  ;;  %1267 = vmatmul.mubr.f32.gmra.mxu1 %v2826_v24 }
  0xf3   : > { %1133 = vmatprep.mubr.f32.mxu0 %v2817_v52  ;;  %1272 = vmatprep.mubr.f32.mxu1 %v2827_v63 }
  0xf6   : > { %1135 = vmatmul.mubr.f32.gmra.mxu0 %v2821_v43  ;;  %1274 = vmatmul.mubr.f32.gmra.mxu1 %v2828_v50 }
  0xf7   : > { %1140 = vmatprep.mubr.f32.mxu0 %v2823_v0 }
  0xfa   : > { %1142 = vmatmul.mubr.f32.gmra.mxu0 %v2826_v24 }
  0xfb   : > { %1147 = vmatprep.mubr.f32.mxu0 %v2827_v63 }
  0xfe   : > { %1149 = vmatmul.mubr.f32.gmra.mxu0 %v2828_v50 }
 0x15c   : > { %v1456_v57 = vpop.f32.mrf.mxu1 }
 0x15e   : > { %v1457_v33 = vpop.f32.mrf.mxu1 }
 0x15f   : > { %v1458_v6 = vadd.f32 %v1457_v33, %v1456_v57 }
 0x161   : > { %v1459_v44 = vpop.f32.mrf.mxu1 }
 0x163   : > { %v1460_v51 = vpop.f32.mrf.mxu1 }
 0x164   : > { %v1412_v14 = vpop.f32.mrf.mxu0  ;;  %v1461_v13 = vadd.f32 %v1460_v51, %v1459_v44 }
 0x165   : > { %v1462_v45 = vpop.f32.mrf.mxu1 }
 0x166   : > { %v1413_v37 = vpop.f32.mrf.mxu0 }
 0x167   : > { %v1463_v27 = vpop.f32.mrf.mxu1  ;;  %v1414_v29 = vadd.f32 %v1413_v37, %v1412_v14 }
 0x168   : > { %v1464_v7 = vadd.f32 %v1463_v27, %v1462_v45 }
 0x169   : > { %v635_v32 = vadd.f32 %v1458_v6, %v1414_v29 }
 0x16b   : > { %v1415_v46 = vpop.f32.mrf.mxu0  ;;  %v1465_v58 = vpop.f32.mrf.mxu1 }
 0x16d   : > { %v1416_v55 = vpop.f32.mrf.mxu0  ;;  %v1466_v26 = vpop.f32.mrf.mxu1 }
 0x16e   : > { %v1417_v12 = vadd.f32 %v1416_v55, %v1415_v46  ;;  %v1467_v40 = vadd.f32 %v1466_v26, %v1465_v58 }
 0x170   : > { %v642_v38 = vadd.f32 %v1461_v13, %v1417_v12 }
 0x171   : > { %v1418_v3 = vpop.f32.mrf.mxu0 }
 0x173   : > { %v1419_v4 = vpop.f32.mrf.mxu0 }
 0x174   : > { %v1420_v48 = vadd.f32 %v1419_v4, %v1418_v3 }
 0x176   : > { %v1421_v9 = vpop.f32.mrf.mxu0  ;;  %v649_v0 = vadd.f32 %v1464_v7, %v1420_v48 }
 0x178   : > { %v1422_v42 = vpop.f32.mrf.mxu0 }
 0x179   : > { %v1423_v22 = vadd.f32 %v1422_v42, %v1421_v9 }
 0x17b   : > { %v656_v45 = vadd.f32 %v1467_v40, %v1423_v22 }
 0x182   : > { %v1544_v5 = vpop.f32.mrf.mxu1 }
 0x184   : > { %v1545_v10 = vpop.f32.mrf.mxu1 }
 0x185   : > { %v1546_v53 = vadd.f32 %v1545_v10, %v1544_v5 }
 0x187   : > { %v1547_v11 = vpop.f32.mrf.mxu1 }
 0x189   : > { %v1548_v21 = vpop.f32.mrf.mxu1 }
 0x18a   : > { %v1549_v43 = vadd.f32 %v1548_v21, %v1547_v11 }
 0x18c   : > { %v1500_v17 = vpop.f32.mrf.mxu0  ;;  %v1550_v60 = vpop.f32.mrf.mxu1 }
 0x18e   : > { %v1501_v54 = vpop.f32.mrf.mxu0  ;;  %v1551_v16 = vpop.f32.mrf.mxu1 }
 0x18f   : > { %v1502_v8 = vadd.f32 %v1501_v54, %v1500_v17  ;;  %v1552_v46 = vadd.f32 %v1551_v16, %v1550_v60 }
 0x191   : > { %v794_v31 = vadd.f32 %v1502_v8, %v635_v32 }
 0x192   : > { %v1503_v15 = vpop.f32.mrf.mxu0  ;;  %v1553_v61 = vpop.f32.mrf.mxu1 }
 0x193   : > { %v929_v47 = vadd.f32 %v1546_v53, %v794_v31 }
 0x194   : > { %v1504_v18 = vpop.f32.mrf.mxu0  ;;  %v1554_v19 = vpop.f32.mrf.mxu1 }
 0x195   : > { %v1505_v34 = vadd.f32 %v1504_v18, %v1503_v15  ;;  %v1555_v42 = vadd.f32 %v1554_v19, %v1553_v61 }
 0x197   : > { %v803_v56 = vadd.f32 %v1505_v34, %v642_v38 }
 0x198   : > { %v1506_v62 = vpop.f32.mrf.mxu0 }
 0x199   : > { %v940_v50 = vadd.f32 %v1549_v43, %v803_v56 }
 0x19a   : > { %v1507_v20 = vpop.f32.mrf.mxu0 }
 0x19b   : > { %v1508_v52 = vadd.f32 %v1507_v20, %v1506_v62 }
 0x19d   : > { %v1509_v1 = vpop.f32.mrf.mxu0  ;;  %v812_v33 = vadd.f32 %v1508_v52, %v649_v0 }
 0x19f   : > { %v1510_v35 = vpop.f32.mrf.mxu0  ;;  %v951_v5 = vadd.f32 %v1552_v46, %v812_v33 }
 0x1a0   : > { %v1511_v44 = vadd.f32 %v1510_v35, %v1509_v1 }
 0x1a2   : > { %v821_v26 = vadd.f32 %v1511_v44, %v656_v45 }
 0x1a4   : > { %v962_v15 = vadd.f32 %v1555_v42, %v821_v26 }
 0x1aa   : > { %v1632_v25 = vpop.f32.mrf.mxu1 }
 0x1ac   : > { %v1633_v2 = vpop.f32.mrf.mxu1 }
 0x1ad   : > { %v1634_v59 = vadd.f32 %v1633_v2, %v1632_v25 }
 0x1ae   : > { %v1635_v28 = vpop.f32.mrf.mxu1 }
 0x1b0   : > { %v1636_v30 = vpop.f32.mrf.mxu1 }
 0x1b1   : > { %v1637_v27 = vadd.f32 %v1636_v30, %v1635_v28 }
 0x1b2   : > { %v1588_v41 = vpop.f32.mrf.mxu0  ;;  %v1638_v36 = vpop.f32.mrf.mxu1 }
 0x1b4   : > { %v1589_v39 = vpop.f32.mrf.mxu0  ;;  %v1639_v63 = vpop.f32.mrf.mxu1 }
 0x1b5   : > { %v1590_v23 = vadd.f32 %v1589_v39, %v1588_v41  ;;  %v1640_v11 = vadd.f32 %v1639_v63, %v1638_v36 }
 0x1b6   : > { %v1591_v49 = vpop.f32.mrf.mxu0  ;;  %v1641_v58 = vpop.f32.mrf.mxu1 }
 0x1b7   : > { %v1130_v24 = vadd.f32 %v1590_v23, %v929_v47 }
 0x1b8   : > { %v1592_v57 = vpop.f32.mrf.mxu0  ;;  %v1642_v21 = vpop.f32.mrf.mxu1 }
 0x1b9   : > { %v1255_v14 = vadd.f32 %v1634_v59, %v1130_v24  ;;  %v1593_v51 = vadd.f32 %v1592_v57, %v1591_v49  ;;  %v1643_v18 = vadd.f32 %v1642_v21, %v1641_v58 }
 0x1ba   : > { %v1594_v37 = vpop.f32.mrf.mxu0 }
 0x1bb   : > { %1280 = vst.msk [vmem:[%s136_s8] sm:$0xff] %vm1279_vm2, %v1255_v14  ;;  %v1137_v55 = vadd.f32 %v1593_v51, %v940_v50 }
 0x1bc   : > { %v1595_v3 = vpop.f32.mrf.mxu0 }
 0x1bd   : > { %v1262_v4 = vadd.f32 %v1637_v27, %v1137_v55  ;;  %v1596_v9 = vadd.f32 %v1595_v3, %v1594_v37 }
 0x1be   : > { %v1597_v10 = vpop.f32.mrf.mxu0 }
 0x1bf   : > { %1281 = vst.msk [vmem:[%s136_s8 + $0x8] sm:$0xff] %vm1279_vm2, %v1262_v4  ;;  %v1144_v17 = vadd.f32 %v1596_v9, %v951_v5 }
 0x1c0   : > { %v1598_v54 = vpop.f32.mrf.mxu0 }
 0x1c1   : > { %v1269_v60 = vadd.f32 %v1640_v11, %v1144_v17  ;;  %v1599_v16 = vadd.f32 %v1598_v54, %v1597_v10 }
 0x1c3   : > { %1282 = vst.msk [vmem:[%s136_s8 + $0x10] sm:$0xff] %vm1279_vm2, %v1269_v60  ;;  %v1151_v62 = vadd.f32 %v1599_v16, %v962_v15 }
 0x1c5   : > { %v1276_v61 = vadd.f32 %v1643_v18, %v1151_v62 }
 0x1c7   : > { %1283 = vst.msk [vmem:[%s136_s8 + $0x18] sm:$0xff] %vm1279_vm2, %v1276_v61 }
 0x1c8   : > { %1700 = shalt.err (!%p1697_p3)
}
 0x1c9   : > { %s1701_s27 = scalar_lea.hbm %s2581_s22, 512  ;;  %s1705_s3 = scalar_lea.hbm %s2630_s2, 2048 }
 0x1ca   : > { %p1702_p4 = scmp.ne.s32.totalorder %s2581_s22, %s1701_s27  ;;  %p1706_p9 = scmp.lt.s32.totalorder %s2581_s22, %s2630_s2 }
 0x1cb   : > { %p1707_p10 = scmp.lt.s32.totalorder %s1705_s3, %s1701_s27 }
 0x1cc   : > { %p1703_p7 = pnand %p1702_p4, %p1806_p5 }
 0x1cd   : > { %p1708_p11 = por %p1707_p10, %p1706_p9 }
 0x1ce   : > { %p1704_p8 = pneg %p1703_p7 }
 0x1d0   : > { %p1709_p12 = pnand %p1708_p11, %p1704_p8 }
 0x1d2   : > { %1712 = shalt.err (!%p1709_p12)
}
 0x1d3   : > { %s1751_s29 = smov 128   ;;  %s1752_s6 = smov 8  }
 0x1d4   : > { %1645 = dma.vmem_to_hbm [thread:$0]  (%p1806_p5), %s2583_s16, 512, %s2581_s22, %s2588_s13, %s1751_s29, %s1751_s29, %s1752_s6  }
 0x1d5 PF: > { %p1651_p13 = scmp.ge.s32.totalorder %s1747_s12, 2  ;;  %s1313_s7 = sand.u32 1, %s1735_s9  }
 0x1d6   : > { %s1314_s8 = scalar_lea.sflag [#allocation4], %s1313_s7 }
 0x1d7   : > { %p1648_p0 = pnand %p1651_p13, %p1810_p6 }
 0x1d9   : > { %p1649_p1 = pneg %p1648_p0 }
 0x1db   : > { %1730 = dma.done.wait (%p1649_p1), %s1314_s8, 512  }
 0x1dc   : > { %1732 = vsyncadd (%p1649_p1), %s1314_s8, 4294966784  ;;  %p12_p2 = scmp.ge.s32.totalorder %s1793_s15, 6   ;;  %s2829_s9 = smov %s1739_s10 }
 0x1dd   : > { %s2830_s10 = smov %s1743_s11  ;;  %s2831_s11 = smov %s1804_s18 }
 0x1de   : > { %s2832_s12 = smov %s1793_s15  ;;  %14 = sbr.rel (!%p12_p2) target bundleno = 3 (0x3), region = 64 }
 0x1e3   :  { %1319 = vsyncpa [#allocation4], 1 }
 0x1e4   :  { %1321 = vsyncpa [#allocation4 + $0x1], 1 }

</bundles_post_ra>
